<compile_context>
chip_gen: v6e
topology: v6e:2x2x1
jax: 0.10.0
libtpu: 0.0.40
codegen_flags: <defaults>
</compile_context>

<pallas_src>
import functools
import math

import jax
import jax.numpy as jnp
from jax.experimental import pallas as pl
from jax.experimental.pallas import tpu as pltpu


def _round_up(x, m):
    return ((x + m - 1) // m) * m


def _pick_divisor_tile(dim, prefs):
    for t in prefs:
        if dim % t == 0:
            return t
    return min(dim, prefs[-1])


def _vmem_budget_bytes():
    """Per-TensorCore VMEM cap, generation aware, with compiler headroom."""
    try:
        cap = int(pltpu.get_tpu_info().vmem_capacity_bytes)
    except Exception:
        cap = 64 << 20  # conservative fallback (v7x per-core size)
    # ~81% of physical: ~52 MiB on v7x (64 MiB/TC), ~104 MiB on v5e/v6e (128 MiB).
    return (cap * 13) // 16


def _resident_spec(shape):
    """Whole-array, grid-invariant (weights/bias) block; single-buffered."""
    index_map = lambda i: (0,) * len(shape)
    try:
        return pl.BlockSpec(shape, index_map, pipeline_mode=pl.Buffered(1))
    except TypeError:  # older jax without pipeline_mode on BlockSpec
        return pl.BlockSpec(shape, index_map)


def _select_tm(M, fits):
    """Largest tm in {512,256,128} that fits VMEM, minimising M padding and
    preferring >=2 grid tiles (megacore). Small M -> single tile sized to M."""
    if M <= 256:
        tm = max(_round_up(M, 16), 16)  # bf16 sublane packing is (16, 128)
        return tm if fits(tm) else None
    best_tm, best_key = None, None
    for tm in (512, 256, 128):
        if not fits(tm):
            continue
        m_pad = _round_up(M, tm)
        key = (0 if m_pad // tm >= 2 else 1, m_pad - M, -tm)
        if best_key is None or key < best_key:
            best_tm, best_key = tm, key
    return best_tm


# --------------------------------------------------------------------------
# Fused path: whole Linear+ReLU stack in ONE pallas_call, weights VMEM-resident.
# --------------------------------------------------------------------------
def _fused_mlp_kernel(*refs, dims_p):
    """refs = (x, w0, b0, ..., w{L-1}, b{L-1}, out[, h_scratch])."""
    num_layers = len(dims_p)
    x_ref = refs[0]
    params = refs[1:1 + 2 * num_layers]
    o_ref = refs[1 + 2 * num_layers]
    h_ref = refs[2 + 2 * num_layers] if len(refs) > 2 + 2 * num_layers else None

    h = x_ref[...]                                   # (tm, K0p) bf16
    for i, (_, np_) in enumerate(dims_p):
        w = params[2 * i][...]                       # (Kp, Np) bf16, resident
        b = params[2 * i + 1][...]                   # (1, Np)  f32
        acc = jnp.dot(h, w, preferred_element_type=jnp.float32) + b
        if i < num_layers - 1:
            # ReLU epilogue; stage the next layer's input through the shared
            # bf16 VMEM scratch (explicit, reused-across-layers footprint).
            h_ref[:, :np_] = jnp.maximum(acc, 0.0).astype(h_ref.dtype)
            h = h_ref[:, :np_]
        else:
            o_ref[...] = acc.astype(o_ref.dtype)


def _fused_mlp_2d(x2d, flat_params, *, out_dim, out_dtype):
    M, K0 = x2d.shape
    num_layers = len(flat_params) // 2
    dims_p = tuple((flat_params[2 * i].shape[0], flat_params[2 * i].shape[1])
                   for i in range(num_layers))
    K0p = dims_p[0][0]
    N_out_p = dims_p[-1][1]
    max_np = max(n for _, n in dims_p)
    max_hid = max((n for _, n in dims_p[:-1]), default=0)
    out_bytes = jnp.dtype(out_dtype).itemsize

    # Resident params: single-buffered bf16 W + (1,Np) f32 bias (sublane-padded).
    w_bytes = sum(kp * np_ * 2 + 8 * np_ * 4 for kp, np_ in dims_p)

    def vmem_needed(tm):
        return (w_bytes
                + 2 * tm * K0p * 2               # x: double-buffered bf16 stream
                + 2 * tm * N_out_p * out_bytes   # out: double-buffered stream
                + tm * max_hid * 2               # bf16 inter-layer scratch
                + tm * max_np * 4                # transient f32 accumulator
                + (2 << 20))                     # margin / internal scratch

    budget = _vmem_budget_bytes()
    tm = _select_tm(M, lambda t: vmem_needed(t) <= budget)
    if tm is None:
        return None  # resident stack doesn't fit -> caller uses tiled fallback

    M_pad = _round_up(M, tm)
    x_p = jnp.zeros((M_pad, K0p), jnp.bfloat16).at[:M, :K0].set(
        x2d.astype(jnp.bfloat16))

    in_specs = [pl.BlockSpec((tm, K0p), lambda i: (i, 0))]
    for li in range(num_layers):
        kp, np_ = dims_p[li]
        in_specs.append(_resident_spec((kp, np_)))   # weight, single-buffered
        in_specs.append(_resident_spec((1, np_)))    # bias,   single-buffered
    out_spec = pl.BlockSpec((tm, N_out_p), lambda i: (i, 0))

    scratch_shapes = []
    if max_hid > 0:
        scratch_shapes.append(pltpu.VMEM((tm, max_hid), jnp.bfloat16))

    flops = sum(2 * M_pad * kp * np_ for kp, np_ in dims_p)
    bytes_accessed = (x_p.size * 2 + M_pad * N_out_p * out_bytes
                      + sum(kp * np_ * 2 + np_ * 4 for kp, np_ in dims_p))
    vmem_limit = int(min(budget, max(int(vmem_needed(tm) * 1.25), 32 << 20)))

    out = pl.pallas_call(
        functools.partial(_fused_mlp_kernel, dims_p=dims_p),
        out_shape=jax.ShapeDtypeStruct((M_pad, N_out_p), out_dtype),
        grid_spec=pltpu.PrefetchScalarGridSpec(
            num_scalar_prefetch=0,
            grid=(M_pad // tm,),
            in_specs=in_specs,
            out_specs=out_spec,
            scratch_shapes=scratch_shapes,
        ),
        compiler_params=pltpu.CompilerParams(
            dimension_semantics=("parallel",),
            vmem_limit_bytes=vmem_limit,
        ),
        cost_estimate=pl.CostEstimate(
            flops=flops, transcendentals=0, bytes_accessed=bytes_accessed),
    )(x_p, *flat_params)
    return out[:M, :out_dim]


# --------------------------------------------------------------------------
# Fallback path: per-layer K/N-tiled matmul + bias (+ReLU) with reduction grid
# axis and an f32 accumulator scratch — used when the fused resident weight
# stack exceeds the per-generation VMEM budget (v7x large hidden dims).
# --------------------------------------------------------------------------
def _layer_matmul_kernel(x_ref, w_ref, b_ref, o_ref, acc_ref, *, relu):
    @pl.when(pl.program_id(2) == 0)
    def _():
        acc_ref[...] = jnp.zeros_like(acc_ref)

    acc_ref[...] += jnp.dot(x_ref[...], w_ref[...],
                            preferred_element_type=jnp.float32)

    @pl.when(pl.program_id(2) == pl.num_programs(2) - 1)
    def _():
        r = acc_ref[...] + b_ref[...]
        if relu:
            r = jnp.maximum(r, 0.0)
        o_ref[...] = r.astype(o_ref.dtype)


def _tiled_layer(x_p, w_p, b_p, *, relu, out_dtype, vmem_limit):
    M_pad, Kp = x_p.shape
    _, Np = w_p.shape
    tm = _pick_divisor_tile(M_pad, (256, 128))
    tk = _pick_divisor_tile(Kp, (512, 256, 128))
    tn = _pick_divisor_tile(Np, (512, 256, 128))
    grid = (M_pad // tm, Np // tn, Kp // tk)
    return pl.pallas_call(
        functools.partial(_layer_matmul_kernel, relu=relu),
        out_shape=jax.ShapeDtypeStruct((M_pad, Np), out_dtype),
        grid_spec=pltpu.PrefetchScalarGridSpec(
            num_scalar_prefetch=0,
            grid=grid,
            in_specs=[
                pl.BlockSpec((tm, tk), lambda i, j, k: (i, k)),
                pl.BlockSpec((tk, tn), lambda i, j, k: (k, j)),
                pl.BlockSpec((1, tn), lambda i, j, k: (0, j)),
            ],
            out_specs=pl.BlockSpec((tm, tn), lambda i, j, k: (i, j)),
            scratch_shapes=[pltpu.VMEM((tm, tn), jnp.float32)],
        ),
        compiler_params=pltpu.CompilerParams(
            dimension_semantics=("parallel", "parallel", "arbitrary"),
            vmem_limit_bytes=vmem_limit,
        ),
    )(x_p, w_p, b_p)


def _tiled_mlp_2d(x2d, flat_params, *, out_dim, out_dtype):
    # TODO(synk): intermediates round-trip HBM here; an emit_pipeline-based
    # weight-streaming fused variant would keep them on-chip for huge layers.
    M, K0 = x2d.shape
    num_layers = len(flat_params) // 2
    K0p = flat_params[0].shape[0]
    M_pad = _round_up(M, 128) if M > 128 else max(_round_up(M, 16), 16)
    h = jnp.zeros((M_pad, K0p), jnp.bfloat16).at[:M, :K0].set(
        x2d.astype(jnp.bfloat16))
    vmem_limit = int(_vmem_budget_bytes())
    for i in range(num_layers):
        last = i == num_layers - 1
        h = _tiled_layer(h, flat_params[2 * i], flat_params[2 * i + 1],
                         relu=not last,
                         out_dtype=out_dtype if last else jnp.bfloat16,
                         vmem_limit=vmem_limit)
    return h[:M, :out_dim]


# --------------------------------------------------------------------------
# Jitted forward entry point.
# --------------------------------------------------------------------------
@functools.partial(jax.jit, static_argnames=("out_dim", "out_dtype", "force_tiled"))
def mlp_forward(x, flat_params, *, out_dim, out_dtype=jnp.float32,
                force_tiled=False):
    lead = x.shape[:-1]
    x2d = x.reshape(-1, x.shape[-1])
    y2d = None
    if not force_tiled:
        y2d = _fused_mlp_2d(x2d, flat_params, out_dim=out_dim,
                            out_dtype=out_dtype)
    if y2d is None:
        y2d = _tiled_mlp_2d(x2d, flat_params, out_dim=out_dim,
                            out_dtype=out_dtype)
    return y2d.reshape(*lead, out_dim)


class MLP:
    """JAX/Pallas port of the PyTorch MLP (Linear + ReLU stack, no ReLU on the
    last layer). Weights are padded to 128-multiples and cast to bf16 ONCE at
    construction; forward runs under jax.jit. Output dtype defaults to f32
    (set out_dtype=jnp.bfloat16 to halve HBM writeback if acceptable)."""

    def __init__(self, input_dim, hidden_dim, output_dim, num_layers, key,
                 out_dtype=jnp.float32):
        self.num_layers = num_layers
        self.output_dim = output_dim
        self.out_dtype = out_dtype
        h = [hidden_dim] * (num_layers - 1)
        dims = list(zip([input_dim] + h, h + [output_dim]))
        self.params = []          # original f32 params (reference / export)
        flat = []
        in_p = _round_up(input_dim, 128)
        for (n_in, n_out) in dims:
            key, kw, kb = jax.random.split(key, 3)
            # Mirror nn.Linear's uniform(-1/sqrt(fan_in), +1/sqrt(fan_in)) init.
            bound = 1.0 / math.sqrt(n_in)
            w = jax.random.uniform(kw, (n_in, n_out), jnp.float32, -bound, bound)
            b = jax.random.uniform(kb, (n_out,), jnp.float32, -bound, bound)
            self.params.append((w, b))
            kp, np_ = _round_up(n_in, 128), _round_up(n_out, 128)
            assert kp == in_p, "layer input dim mismatch"
            w_p = jnp.zeros((kp, np_), jnp.bfloat16).at[:n_in, :n_out].set(
                w.astype(jnp.bfloat16))
            b_p = jnp.zeros((1, np_), jnp.float32).at[0, :n_out].set(b)
            flat.extend([w_p, b_p])
            in_p = np_
        self.flat_params = tuple(flat)   # padded, bf16/f32, built once

    def __call__(self, x, *, force_tiled=False):
        return mlp_forward(x, self.flat_params, out_dim=self.output_dim,
                           out_dtype=self.out_dtype, force_tiled=force_tiled)


def _ref_forward(params, x, num_layers):
    # Pure-JAX f32 reference for verification.
    x2d = x.reshape(-1, x.shape[-1])
    for i, (w, b) in enumerate(params):
        x2d = x2d @ w + b
        if i < num_layers - 1:
            x2d = jnp.maximum(x2d, 0.0)
    return x2d.reshape(*x.shape[:-1], x2d.shape[-1])


if __name__ == "__main__":
    key = jax.random.PRNGKey(0)
    k_init, k_x = jax.random.split(key)

    batch, seq = 2, 8
    input_dim, hidden_dim, output_dim, num_layers = 32, 64, 16, 3

    mlp = MLP(input_dim, hidden_dim, output_dim, num_layers, k_init)
    x = jax.random.normal(k_x, (batch, seq, input_dim), jnp.float32)

    ref = _ref_forward(mlp.params, x, num_layers)

    # Fused (VMEM-resident weights) path.
    out = jax.block_until_ready(mlp(x))
    assert out.shape == (batch, seq, output_dim)
    # bf16 MXU inputs (f32 accumulation) => slightly looser tolerance than f32.
    assert jnp.allclose(out, ref, atol=2e-2, rtol=2e-2), "fused path mismatch"

    # Also exercise the K/N-tiled per-layer fallback (the path large hidden
    # dims take on v7x) and verify it against the same reference.
    out_tiled = jax.block_until_ready(mlp(x, force_tiled=True))
    assert out_tiled.shape == (batch, seq, output_dim)
    assert jnp.allclose(out_tiled, ref, atol=2e-2, rtol=2e-2), "tiled path mismatch"

    print("KERNEL_OK")
</pallas_src>

<mosaic_0001>
module attributes {stable_mosaic.version = 11 : i64} {
  func.func @_fused_mlp_kernel(%arg0: i32, %arg1: memref<16x128xbf16, #tpu.memory_space<vmem>>, %arg2: memref<128x128xbf16, #tpu.memory_space<vmem>>, %arg3: memref<1x128xf32, #tpu.memory_space<vmem>>, %arg4: memref<128x128xbf16, #tpu.memory_space<vmem>>, %arg5: memref<1x128xf32, #tpu.memory_space<vmem>>, %arg6: memref<128x128xbf16, #tpu.memory_space<vmem>>, %arg7: memref<1x128xf32, #tpu.memory_space<vmem>>, %arg8: memref<16x128xf32, #tpu.memory_space<vmem>>, %arg9: memref<16x128xbf16, #tpu.memory_space<vmem>>) attributes {dimension_semantics = [#tpu.dimension_semantics<parallel>], iteration_bounds = array<i64: 1>, scalar_prefetch = 0 : i64, scratch_operands = 1 : i64, tpu.core_type = #tpu.core_type<tc>, window_params = [{transform_indices = @transform_0, window_bounds = array<i64: 16, 128>}, {pipeline_mode = #tpu.pipeline_mode<synchronous>, transform_indices = @transform_1, window_bounds = array<i64: 128, 128>}, {pipeline_mode = #tpu.pipeline_mode<synchronous>, transform_indices = @transform_2, window_bounds = array<i64: 1, 128>}, {pipeline_mode = #tpu.pipeline_mode<synchronous>, transform_indices = @transform_3, window_bounds = array<i64: 128, 128>}, {pipeline_mode = #tpu.pipeline_mode<synchronous>, transform_indices = @transform_4, window_bounds = array<i64: 1, 128>}, {pipeline_mode = #tpu.pipeline_mode<synchronous>, transform_indices = @transform_5, window_bounds = array<i64: 128, 128>}, {pipeline_mode = #tpu.pipeline_mode<synchronous>, transform_indices = @transform_6, window_bounds = array<i64: 1, 128>}, {transform_indices = @transform_7, window_bounds = array<i64: 16, 128>}]} {
    %c0 = arith.constant 0 : index
    %c0_0 = arith.constant 0 : index
    %0 = vector.load %arg1[%c0, %c0_0] : memref<16x128xbf16, #tpu.memory_space<vmem>>, vector<16x128xbf16>
    %c0_1 = arith.constant 0 : index
    %c0_2 = arith.constant 0 : index
    %1 = vector.load %arg2[%c0_1, %c0_2] : memref<128x128xbf16, #tpu.memory_space<vmem>>, vector<128x128xbf16>
    %c0_3 = arith.constant 0 : index
    %c0_4 = arith.constant 0 : index
    %2 = vector.load %arg3[%c0_3, %c0_4] : memref<1x128xf32, #tpu.memory_space<vmem>>, vector<1x128xf32>
    %cst = arith.constant dense<0.000000e+00> : vector<16x128xf32>
    %3 = tpu.matmul %0, %1, %cst {dimension_numbers = #tpu.dot_dimension_numbers<[1], [0], [0], [1], [0, 0, 1, 1], [], []>} : vector<16x128xbf16>, vector<128x128xbf16>, vector<16x128xf32> -> vector<16x128xf32>
    %4 = vector.broadcast %2 : vector<1x128xf32> to vector<16x128xf32>
    %5 = arith.addf %3, %4 : vector<16x128xf32>
    %cst_5 = arith.constant 0.000000e+00 : f32
    %6 = vector.broadcast %cst_5 : f32 to vector<16x128xf32>
    %7 = arith.maximumf %5, %6 : vector<16x128xf32>
    %8 = arith.truncf %7 : vector<16x128xf32> to vector<16x128xbf16>
    %c0_6 = arith.constant 0 : index
    %c0_7 = arith.constant 0 : index
    %9 = vector.load %arg9[%c0_6, %c0_7] : memref<16x128xbf16, #tpu.memory_space<vmem>>, vector<16x128xbf16>
    tpu.vector_store %arg9[%c0_6, %c0_7], %8 {strides = array<i32>} : memref<16x128xbf16, #tpu.memory_space<vmem>>, vector<16x128xbf16>,
    %c0_8 = arith.constant 0 : index
    %c0_9 = arith.constant 0 : index
    %10 = vector.load %arg9[%c0_8, %c0_9] : memref<16x128xbf16, #tpu.memory_space<vmem>>, vector<16x128xbf16>
    %c0_10 = arith.constant 0 : index
    %c0_11 = arith.constant 0 : index
    %11 = vector.load %arg4[%c0_10, %c0_11] : memref<128x128xbf16, #tpu.memory_space<vmem>>, vector<128x128xbf16>
    %c0_12 = arith.constant 0 : index
    %c0_13 = arith.constant 0 : index
    %12 = vector.load %arg5[%c0_12, %c0_13] : memref<1x128xf32, #tpu.memory_space<vmem>>, vector<1x128xf32>
    %cst_14 = arith.constant dense<0.000000e+00> : vector<16x128xf32>
    %13 = tpu.matmul %10, %11, %cst_14 {dimension_numbers = #tpu.dot_dimension_numbers<[1], [0], [0], [1], [0, 0, 1, 1], [], []>} : vector<16x128xbf16>, vector<128x128xbf16>, vector<16x128xf32> -> vector<16x128xf32>
    %14 = vector.broadcast %12 : vector<1x128xf32> to vector<16x128xf32>
    %15 = arith.addf %13, %14 : vector<16x128xf32>
    %cst_15 = arith.constant 0.000000e+00 : f32
    %16 = vector.broadcast %cst_15 : f32 to vector<16x128xf32>
    %17 = arith.maximumf %15, %16 : vector<16x128xf32>
    %18 = arith.truncf %17 : vector<16x128xf32> to vector<16x128xbf16>
    %c0_16 = arith.constant 0 : index
    %c0_17 = arith.constant 0 : index
    %19 = vector.load %arg9[%c0_16, %c0_17] : memref<16x128xbf16, #tpu.memory_space<vmem>>, vector<16x128xbf16>
    tpu.vector_store %arg9[%c0_16, %c0_17], %18 {strides = array<i32>} : memref<16x128xbf16, #tpu.memory_space<vmem>>, vector<16x128xbf16>,
    %c0_18 = arith.constant 0 : index
    %c0_19 = arith.constant 0 : index
    %20 = vector.load %arg9[%c0_18, %c0_19] : memref<16x128xbf16, #tpu.memory_space<vmem>>, vector<16x128xbf16>
    %c0_20 = arith.constant 0 : index
    %c0_21 = arith.constant 0 : index
    %21 = vector.load %arg6[%c0_20, %c0_21] : memref<128x128xbf16, #tpu.memory_space<vmem>>, vector<128x128xbf16>
    %c0_22 = arith.constant 0 : index
    %c0_23 = arith.constant 0 : index
    %22 = vector.load %arg7[%c0_22, %c0_23] : memref<1x128xf32, #tpu.memory_space<vmem>>, vector<1x128xf32>
    %cst_24 = arith.constant dense<0.000000e+00> : vector<16x128xf32>
    %23 = tpu.matmul %20, %21, %cst_24 {dimension_numbers = #tpu.dot_dimension_numbers<[1], [0], [0], [1], [0, 0, 1, 1], [], []>} : vector<16x128xbf16>, vector<128x128xbf16>, vector<16x128xf32> -> vector<16x128xf32>
    %24 = vector.broadcast %22 : vector<1x128xf32> to vector<16x128xf32>
    %25 = arith.addf %23, %24 : vector<16x128xf32>
    %c0_25 = arith.constant 0 : index
    %c0_26 = arith.constant 0 : index
    %26 = vector.load %arg8[%c0_25, %c0_26] : memref<16x128xf32, #tpu.memory_space<vmem>>, vector<16x128xf32>
    tpu.vector_store %arg8[%c0_25, %c0_26], %25 {strides = array<i32>} : memref<16x128xf32, #tpu.memory_space<vmem>>, vector<16x128xf32>,
    return
  }
  func.func @transform_0(%arg0: i32) -> (i32, i32) {
    %c0_i32 = arith.constant 0 : i32
    %c0_i32_0 = arith.constant 0 : i32
    return %arg0, %c0_i32 : i32, i32
  }
  func.func @transform_1(%arg0: i32) -> (i32, i32) {
    %c0_i32 = arith.constant 0 : i32
    %c0_i32_0 = arith.constant 0 : i32
    %c0_i32_1 = arith.constant 0 : i32
    return %c0_i32, %c0_i32_0 : i32, i32
  }
  func.func @transform_2(%arg0: i32) -> (i32, i32) {
    %c0_i32 = arith.constant 0 : i32
    %c0_i32_0 = arith.constant 0 : i32
    %c0_i32_1 = arith.constant 0 : i32
    return %c0_i32, %c0_i32_0 : i32, i32
  }
  func.func @transform_3(%arg0: i32) -> (i32, i32) {
    %c0_i32 = arith.constant 0 : i32
    %c0_i32_0 = arith.constant 0 : i32
    %c0_i32_1 = arith.constant 0 : i32
    return %c0_i32, %c0_i32_0 : i32, i32
  }
  func.func @transform_4(%arg0: i32) -> (i32, i32) {
    %c0_i32 = arith.constant 0 : i32
    %c0_i32_0 = arith.constant 0 : i32
    %c0_i32_1 = arith.constant 0 : i32
    return %c0_i32, %c0_i32_0 : i32, i32
  }
  func.func @transform_5(%arg0: i32) -> (i32, i32) {
    %c0_i32 = arith.constant 0 : i32
    %c0_i32_0 = arith.constant 0 : i32
    %c0_i32_1 = arith.constant 0 : i32
    return %c0_i32, %c0_i32_0 : i32, i32
  }
  func.func @transform_6(%arg0: i32) -> (i32, i32) {
    %c0_i32 = arith.constant 0 : i32
    %c0_i32_0 = arith.constant 0 : i32
    %c0_i32_1 = arith.constant 0 : i32
    return %c0_i32, %c0_i32_0 : i32, i32
  }
  func.func @transform_7(%arg0: i32) -> (i32, i32) {
    %c0_i32 = arith.constant 0 : i32
    %c0_i32_0 = arith.constant 0 : i32
    return %arg0, %c0_i32 : i32, i32
  }
}

</mosaic_0001>

<bundles_post_ra>
// kernel: mlp_forward.1
= control target key start
LH: loop header
LB: loop body
LE: loop exit
PB: predicated region body
PF: predicated region fallthrough
CT: control target
= control target key end

     0   :  { %12 = vsyncpa [#allocation4], 0  ;;  %s797_s0 = inlined_call_operand.vmem [shape: bf16[16,128], index: 0, kind: input, shape index: {}]   ;;  %s798_s1 = inlined_call_operand.hbm [shape: bf16[128,128], index: 1, kind: input, shape index: {}]   ;;  %s799_s2 = inlined_call_operand.vmem [shape: f32[1,128], index: 2, kind: input, shape index: {}]   ;;  %s800_s3 = inlined_call_operand.hbm [shape: bf16[128,128], index: 3, kind: input, shape index: {}]   ;;  %s801_s4 = inlined_call_operand.vmem [shape: f32[1,128], index: 4, kind: input, shape index: {}]   ;;  %s802_s5 = inlined_call_operand.hbm [shape: bf16[128,128], index: 5, kind: input, shape index: {}]   ;;  %s803_s6 = inlined_call_operand.vmem [shape: f32[1,128], index: 6, kind: input, shape index: {}]   ;;  %s804_s7 = inlined_call_operand.vmem [shape: f32[16,128], index: 7, kind: output, shape index: {}]  }
   0x1   :  { %13 = vsyncpa [#allocation6], 0  ;;  %s693_s24 = smov [#allocation5]   ;;  %s694_s26 = smov [#allocation3]  }
   0x2   :  { %s35_s25 = sshll.u32 %s693_s24, 4  ;;  %s21_s27 = sshll.u32 %s694_s26, 4  ;;  %s36_s25 = int_to_ptr.vmem [resolvable:$true] %s35_s25  ;;  %s22_s27 = int_to_ptr.vmem [resolvable:$true] %s21_s27 }
   0x3   :  { %s637_s28 = scalar_lea.vmem %s36_s25, 1024  ;;  %p642_p1 = scmp.lt.s32.totalorder %s36_s25, %s36_s25 }
   0x4   :  { %p638_p0 = scmp.ne.s32.totalorder %s36_s25, %s637_s28  ;;  %p643_p2 = scmp.lt.s32.totalorder %s637_s28, %s637_s28 }
   0x6   :  { %p644_p3 = por %p643_p2, %p642_p1 }
   0x8   :  { %p645_p4 = pnand %p644_p3, %p638_p0 }
   0xa   :  { %648 = shalt.err (!%p645_p4)
}
   0xb   :  { %s695_s29 = smov 64   ;;  %s696_s30 = smov 4  }
   0xc   :  { %41 = dma.hbm_to_vmem [thread:$0]  %s800_s3, 1024, %s36_s25, [#allocation6], %s695_s29, %s695_s29, %s696_s30  }
   0xd   :  { %s657_s10 = scalar_lea.vmem %s22_s27, 1024  ;;  %p662_p6 = scmp.lt.s32.totalorder %s22_s27, %s22_s27 }
   0xe   :  { %p658_p5 = scmp.ne.s32.totalorder %s22_s27, %s657_s10  ;;  %p663_p7 = scmp.lt.s32.totalorder %s657_s10, %s657_s10 }
  0x10   :  { %p664_p8 = por %p663_p7, %p662_p6 }
  0x12   :  { %p665_p9 = pnand %p664_p8, %p658_p5 }
  0x14   :  { %668 = shalt.err (!%p665_p9)
}
  0x15   :  { %27 = dma.hbm_to_vmem [thread:$0]  %s798_s1, 1024, %s22_s27, [#allocation4], %s695_s29, %s695_s29, %s696_s30  }
  0x16   :  { %s697_s13 = smov [#allocation7]  }
  0x17   :  { %s49_s14 = sshll.u32 %s697_s13, 4  ;;  %s50_s14 = int_to_ptr.vmem [resolvable:$true] %s49_s14 }
  0x18   :  { %s677_s15 = scalar_lea.vmem %s50_s14, 1024  ;;  %p682_p11 = scmp.lt.s32.totalorder %s50_s14, %s50_s14 }
  0x19   :  { %p678_p10 = scmp.ne.s32.totalorder %s50_s14, %s677_s15  ;;  %p683_p12 = scmp.lt.s32.totalorder %s677_s15, %s677_s15 }
  0x1b   :  { %p684_p13 = por %p683_p12, %p682_p11 }
  0x1d   :  { %p685_p0 = pnand %p684_p13, %p678_p10 }
  0x1f   :  { %688 = shalt.err (!%p685_p0)
}
  0x20   :  { %55 = dma.hbm_to_vmem [thread:$0]  %s802_s5, 1024, %s50_s14, [#allocation6], %s695_s29, %s695_s29, %s696_s30  }
  0x21   :  { %689 = dma.done.wait [#allocation4], 1024  }
  0x22   :  { %690 = vsyncadd [#allocation4], 4294966272 }
  0x23   :  { %691 = dma.done.wait [#allocation6], 2048  }
  0x24   :  { %692 = vsyncadd [#allocation6], 4294965248  ;;  %v698_v0 = vmov 0.0   ;;  %vm699_vm0 = vmmov 0   ;;  %v602_v1 = vld [vmem:[#allocation3 + $0x38] sm:$0xff]   ;;  %v603_v2 = vld [vmem:[#allocation3 + $0x30] sm:$0xff]  }
  0x25   :  { %535 = vmatprep.subr.bf16.mxu0 %v698_v0  ;;  %551 = vmatprep.mubr.msk.bf16.mxu0 %vm699_vm0, %v698_v0  ;;  %v604_v3 = vld [vmem:[#allocation3 + $0x28] sm:$0xff]   ;;  %v611_v4 = vld [vmem:[#allocation5 + $0x38] sm:$0xff]   ;;  %v605_v5 = vld [vmem:[#allocation3 + $0x20] sm:$0xff]  }
  0x26   :  { %555 = vmatprep.subr.bf16.mxu1 %v698_v0  ;;  %571 = vmatprep.mubr.msk.bf16.mxu1 %vm699_vm0, %v698_v0  ;;  %v612_v6 = vld [vmem:[#allocation5 + $0x30] sm:$0xff]   ;;  %v606_v7 = vld [vmem:[#allocation3 + $0x18] sm:$0xff]   ;;  %v613_v8 = vld [vmem:[#allocation5 + $0x28] sm:$0xff]  }
  0x27   :  { %536 = vmatpush3.bf16.msra.mxu0 %v602_v1  ;;  %556 = vmatpush3.bf16.msra.mxu1 %v611_v4  ;;  %v607_v9 = vld [vmem:[#allocation3 + $0x10] sm:$0xff]   ;;  %v608_v10 = vld [vmem:[#allocation3 + $0x8] sm:$0xff]   ;;  %v609_v11 = vld [vmem:[#allocation3] sm:$0xff]  }
  0x28   :  { %537 = vmatprep.subr.bf16.mxu0 %v698_v0  ;;  %557 = vmatprep.subr.bf16.mxu1 %v698_v0  ;;  %v610_v12 = vld [vmem:[%s797_s0] sm:$0xff]   ;;  %v614_v13 = vld [vmem:[#allocation5 + $0x20] sm:$0xff]   ;;  %v616_v15 = vld [vmem:[#allocation5 + $0x10] sm:$0xff]  }
  0x29   :  { %v615_v14 = vld [vmem:[#allocation5 + $0x18] sm:$0xff]   ;;  %v617_v16 = vld [vmem:[#allocation5 + $0x8] sm:$0xff]   ;;  %v618_v17 = vld [vmem:[#allocation5] sm:$0xff]  }
  0x2a   :  { %v620_v18 = vld [vmem:[#allocation7 + $0x38] sm:$0xff]   ;;  %v621_v19 = vld [vmem:[#allocation7 + $0x30] sm:$0xff]   ;;  %v622_v20 = vld [vmem:[#allocation7 + $0x28] sm:$0xff]  }
  0x2b   :  { %538 = vmatpush3.bf16.msra.mxu0 %v603_v2  ;;  %558 = vmatpush3.bf16.msra.mxu1 %v612_v6  ;;  %v460_v21 = vld [vmem:[%s799_s2] ss:$0 sm:$0xff]  ;;  %v623_v32 = vld [vmem:[#allocation7 + $0x20] sm:$0xff]   ;;  %v625_v34 = vld [vmem:[#allocation7 + $0x10] sm:$0xff]  }
  0x2c   :  { %539 = vmatprep.subr.bf16.mxu0 %v698_v0  ;;  %559 = vmatprep.subr.bf16.mxu1 %v698_v0  ;;  %v624_v33 = vld [vmem:[#allocation7 + $0x18] sm:$0xff]   ;;  %v626_v35 = vld [vmem:[#allocation7 + $0x8] sm:$0xff]   ;;  %v627_v36 = vld [vmem:[#allocation7] sm:$0xff]  }
  0x2d   :  { %v472_v37 = vld [vmem:[%s801_s4] ss:$0 sm:$0xff] }
  0x2e   :  { %v484_v48 = vld [vmem:[%s803_s6] ss:$0 sm:$0xff] }
  0x2f   :  { %540 = vmatpush3.bf16.msra.mxu0 %v604_v3  ;;  %560 = vmatpush3.bf16.msra.mxu1 %v613_v8 }
  0x30   :  { %541 = vmatprep.subr.bf16.mxu0 %v698_v0  ;;  %561 = vmatprep.subr.bf16.mxu1 %v698_v0 }
  0x33   :  { %542 = vmatpush3.bf16.msra.mxu0 %v605_v5  ;;  %562 = vmatpush3.bf16.msra.mxu1 %v614_v13 }
  0x34   :  { %543 = vmatprep.subr.bf16.mxu0 %v698_v0  ;;  %563 = vmatprep.subr.bf16.mxu1 %v698_v0 }
  0x37   :  { %544 = vmatpush3.bf16.msra.mxu0 %v606_v7  ;;  %564 = vmatpush3.bf16.msra.mxu1 %v615_v14 }
  0x38   :  { %545 = vmatprep.subr.bf16.mxu0 %v698_v0  ;;  %565 = vmatprep.subr.bf16.mxu1 %v698_v0 }
  0x3b   :  { %546 = vmatpush3.bf16.msra.mxu0 %v607_v9  ;;  %566 = vmatpush3.bf16.msra.mxu1 %v616_v15 }
  0x3c   :  { %547 = vmatprep.subr.bf16.mxu0 %v698_v0  ;;  %567 = vmatprep.subr.bf16.mxu1 %v698_v0 }
  0x3f   :  { %548 = vmatpush3.bf16.msra.mxu0 %v608_v10  ;;  %568 = vmatpush3.bf16.msra.mxu1 %v617_v16 }
  0x40   :  { %549 = vmatprep.subr.bf16.mxu0 %v698_v0  ;;  %569 = vmatprep.subr.bf16.mxu1 %v698_v0 }
  0x43   :  { %550 = vmatpush3.bf16.msra.mxu0 %v609_v11  ;;  %570 = vmatpush3.bf16.msra.mxu1 %v618_v17 }
  0x44   :  { %575 = vmatprep.subr.bf16.mxu0 %v698_v0 }
  0x46   :  { %552 = vmatmul.mubr.bf16.vlgmr.msra.gmra.mxu0 %v610_v12 }
  0x47   :  { %591 = vmatprep.mubr.msk.bf16.mxu0 %vm699_vm0, %v698_v0  ;;  %576 = vmatpush3.bf16.msra.mxu0 %v620_v18 }
  0x48   :  { %577 = vmatprep.subr.bf16.mxu0 %v698_v0 }
  0x4b   :  { %578 = vmatpush3.bf16.msra.mxu0 %v621_v19 }
  0x4c   :  { %579 = vmatprep.subr.bf16.mxu0 %v698_v0 }
  0x4f   :  { %580 = vmatpush3.bf16.msra.mxu0 %v622_v20 }
  0x50   :  { %581 = vmatprep.subr.bf16.mxu0 %v698_v0 }
  0x53   :  { %582 = vmatpush3.bf16.msra.mxu0 %v623_v32 }
  0x54   :  { %583 = vmatprep.subr.bf16.mxu0 %v698_v0 }
  0x57   :  { %584 = vmatpush3.bf16.msra.mxu0 %v624_v33 }
  0x58   :  { %585 = vmatprep.subr.bf16.mxu0 %v698_v0 }
  0x5b   :  { %586 = vmatpush3.bf16.msra.mxu0 %v625_v34 }
  0x5c   :  { %587 = vmatprep.subr.bf16.mxu0 %v698_v0 }
  0x5f   :  { %588 = vmatpush3.bf16.msra.mxu0 %v626_v35 }
  0x60   :  { %589 = vmatprep.subr.bf16.mxu0 %v698_v0 }
  0x63   :  { %590 = vmatpush3.bf16.msra.mxu0 %v627_v36 }
 0x106   :  { %v181_v22 = vpop.f32.mrf.mxu0 }
 0x107   :  { %v182_v24 = vadd.f32 %v460_v21, %v181_v22 }
 0x108   :  { %v553_v23 = vpop.f32.mrf.mxu0 }
 0x109   :  { %v188_v28 = vmax.f32 %v182_v24, 0.0 }
 0x10a   :  { %v184_v25 = vpop.f32.mrf.mxu0 }
 0x10b   :  { %v185_v26 = vadd.f32 %v460_v21, %v184_v25 }
 0x10c   :  { %v554_v27 = vpop.f32.mrf.mxu0 }
 0x10d   :  { %v189_v29 = vmax.f32 %v185_v26, 0.0 }
 0x10f   :  { %v501_v30 = vpack.c.bf16 %v189_v29, %v188_v28 }
 0x111   :  { %502 = vst [vmem:[#allocation2] sm:$0xff] %v501_v30  }
 0x118   :  { %v619_v31 = vld [vmem:[#allocation2] sm:$0xff]  }
 0x119   :  { %572 = vmatmul.mubr.bf16.vlgmr.msra.gmra.mxu1 %v619_v31 }
 0x1d9   :  { %v313_v38 = vpop.f32.mrf.mxu1 }
 0x1da   :  { %v314_v40 = vadd.f32 %v472_v37, %v313_v38 }
 0x1db   :  { %v573_v39 = vpop.f32.mrf.mxu1 }
 0x1dc   :  { %v320_v44 = vmax.f32 %v314_v40, 0.0 }
 0x1dd   :  { %v316_v41 = vpop.f32.mrf.mxu1 }
 0x1de   :  { %v317_v42 = vadd.f32 %v472_v37, %v316_v41 }
 0x1df   :  { %v574_v43 = vpop.f32.mrf.mxu1 }
 0x1e0   :  { %v321_v45 = vmax.f32 %v317_v42, 0.0 }
 0x1e2   :  { %v506_v46 = vpack.c.bf16 %v321_v45, %v320_v44 }
 0x1e4   :  { %507 = vst [vmem:[#allocation2] sm:$0xff] %v506_v46  }
 0x1eb   :  { %v628_v47 = vld [vmem:[#allocation2] sm:$0xff]  }
 0x1ec   :  { %592 = vmatmul.mubr.bf16.vlgmr.msra.gmra.mxu0 %v628_v47 }
 0x2ac   :  { %v445_v49 = vpop.f32.mrf.mxu0 }
 0x2ad   :  { %v446_v50 = vadd.f32 %v484_v48, %v445_v49 }
 0x2ae   :  { %v593_v51 = vpop.f32.mrf.mxu0 }
 0x2af   :  { %452 = vst [vmem:[%s804_s7] sm:$0xff] %v446_v50 }
 0x2b0   :  { %v448_v52 = vpop.f32.mrf.mxu0 }
 0x2b1   :  { %v449_v53 = vadd.f32 %v484_v48, %v448_v52 }
 0x2b2   :  { %v594_v54 = vpop.f32.mrf.mxu0 }
 0x2b3   :  { %453 = vst [vmem:[%s804_s7 + $0x8] sm:$0xff] %v449_v53 }
 0x2b4   :  { %458 = vsyncpa [#allocation4], 1 }
 0x2b5   :  { %459 = vsyncpa [#allocation6], 1 }

</bundles_post_ra>
